<compile_context>
chip_gen: v5e
topology: v5e:2x2
jax: 0.10.0
libtpu: 0.0.40
codegen_flags: <defaults>
</compile_context>

<pallas_src>
import functools

import jax
import jax.numpy as jnp
from jax.experimental import pallas as pl
from jax.experimental.pallas import tpu as pltpu


# -----------------------------------------------------------------------------
# Fused kernel: Chebyshev propagation + 1x1 Conv1d   (one grid step per batch)
# -----------------------------------------------------------------------------
def _gcn_fused_kernel(x_ref, adjT_ref, w_ref, b_ref, o_ref, *, K, compute_dtype):
    # x_ref   : (1, C_pad, N_pad)          one batch element
    # adjT_ref: (N_pad, N_pad)             adj^T (host-transposed, resident)
    # w_ref   : (K, C_out_pad, C_pad)      conv weight, w_ref[k] multiplies Y_k
    # b_ref   : (C_out_pad, 1)             conv bias (resident)
    # o_ref   : (1, C_out_pad, N_pad)
    x = x_ref[0].astype(jnp.float32)              # recurrence state kept in f32
    adj_t = adjT_ref[...].astype(compute_dtype)   # MXU operand (bf16 by default)
    bias = b_ref[...].astype(jnp.float32)

    def conv_hop(k, y_f32):
        # static k -> static (cheap) weight slice; f32 accumulation on the MXU
        wk = w_ref[k].astype(compute_dtype)                       # (C_out_pad, C_pad)
        return jnp.dot(wk, y_f32.astype(compute_dtype),
                       preferred_element_type=jnp.float32)

    # hop 0: Ls[0] = I  ->  Y_0 = X
    acc = conv_hop(0, x)                                          # (C_out_pad, N_pad) f32
    y_prev = x
    if K >= 2:
        # hop 1: Ls[1] = adj  ->  Y_1 = X @ adj^T
        y_cur = jnp.dot(x.astype(compute_dtype), adj_t,
                        preferred_element_type=jnp.float32)
        acc += conv_hop(1, y_cur)
        # hops 2..K-1: Y_k = 2*Y_{k-1} @ adj^T - Y_{k-2}   (f32 state)
        for k in range(2, K):
            y_next = (2.0 * jnp.dot(y_cur.astype(compute_dtype), adj_t,
                                    preferred_element_type=jnp.float32)
                      - y_prev)
            acc += conv_hop(k, y_next)
            y_prev, y_cur = y_cur, y_next

    o_ref[0] = (acc + bias).astype(o_ref.dtype)


def gcn_conv_hop(x, adj, weight, bias, K, *, compute_dtype=jnp.bfloat16):
    """x:(B,C,N)  adj:(N,N)  weight:(C_out, C*K) flattened as c*K+k  bias:(C_out,)"""
    B, C, N = x.shape
    C_out = weight.shape[0]

    # dtype-aware sublane alignment for the per-batch channel rows
    row_align = 16 if jnp.dtype(x.dtype) == jnp.dtype(jnp.bfloat16) else 8
    C_pad = -(-C // row_align) * row_align
    C_out_pad = -(-C_out // 8) * 8
    N_pad = -(-N // 128) * 128          # lane dim of every operand + contraction depth

    # ---- host-side glue (tiny, one-time) --------------------------------
    x_p = jnp.pad(x, ((0, 0), (0, C_pad - C), (0, N_pad - N)))        # (B, C_pad, N_pad)
    adj_t = jnp.pad(jnp.swapaxes(adj, 0, 1),
                    ((0, N_pad - N), (0, N_pad - N)))                 # (N_pad, N_pad)
    # conv weight: (C_out, C*K) index c*K+k  ->  (K, C_out_pad, C_pad) indexed [k, o, c]
    w3 = jnp.transpose(weight.reshape(C_out, C, K), (2, 0, 1))        # (K, C_out, C)
    w3 = jnp.pad(w3, ((0, 0), (0, C_out_pad - C_out), (0, C_pad - C)))
    b2 = jnp.pad(bias, (0, C_out_pad - C_out)).reshape(C_out_pad, 1)

    # ---- scoped-VMEM budget: actual per-step blocks + kernel scratch ------
    f32b = 4
    in_b = jnp.dtype(x.dtype).itemsize
    cd_b = jnp.dtype(compute_dtype).itemsize
    x_blk = C_pad * N_pad * in_b
    out_blk = C_out_pad * N_pad * in_b
    resident = (N_pad * N_pad * jnp.dtype(adj_t.dtype).itemsize       # adj^T
                + K * C_out_pad * C_pad * jnp.dtype(w3.dtype).itemsize
                + C_out_pad * jnp.dtype(b2.dtype).itemsize)
    scratch = (N_pad * N_pad * cd_b                                   # adj^T cast copy
               + 3 * C_pad * N_pad * (f32b + cd_b)                    # Y_{k-2},Y_{k-1},Y_k (+casts)
               + C_out_pad * N_pad * f32b                             # conv accumulator
               + K * C_out_pad * C_pad * cd_b)                        # weight cast copies
    need = 2 * (x_blk + out_blk) + resident + scratch                 # 2x = double-buffered blocks
    try:
        vmem_cap = int(pltpu.get_tpu_info().vmem_capacity_bytes)
    except Exception:  # pragma: no cover - defensive fallback
        vmem_cap = 64 * 1024 * 1024       # smallest per-core VMEM (v7x)
    vmem_limit = int(min(max(2 * need, 8 * 1024 * 1024), (vmem_cap * 85) // 100))

    kernel = functools.partial(_gcn_fused_kernel, K=K, compute_dtype=compute_dtype)
    out = pl.pallas_call(
        kernel,
        out_shape=jax.ShapeDtypeStruct((B, C_out_pad, N_pad), x.dtype),
        grid=(B,),
        in_specs=[
            pl.BlockSpec((1, C_pad, N_pad), lambda b: (b, 0, 0)),       # per-batch, pipelined
            pl.BlockSpec((N_pad, N_pad), lambda b: (0, 0)),             # adj^T: resident
            pl.BlockSpec((K, C_out_pad, C_pad), lambda b: (0, 0, 0)),   # weight: resident
            pl.BlockSpec((C_out_pad, 1), lambda b: (0, 0)),             # bias: resident
        ],
        out_specs=pl.BlockSpec((1, C_out_pad, N_pad), lambda b: (b, 0, 0)),
        compiler_params=pltpu.CompilerParams(
            dimension_semantics=("parallel",),     # independent batch steps (2 TCs on v7x)
            vmem_limit_bytes=vmem_limit,
        ),
    )(x_p, adj_t, w3, b2)
    return out[:, :C_out, :N]


# -----------------------------------------------------------------------------
# Pure-JAX reference (mirrors the PyTorch forward exactly; requires K >= 2,
# same as the PyTorch module which always stacks [I, adj, ...]).
# -----------------------------------------------------------------------------
def gcn_conv_hop_ref(x, adj, weight, bias, K):
    B, C, N = x.shape
    L0 = jnp.eye(N, dtype=x.dtype)
    L1 = adj
    Ls = [L0, L1]
    for _ in range(2, K):
        L2 = 2.0 * (adj @ L1) - L0
        L0, L1 = L1, L2
        Ls.append(L2)
    Lap = jnp.swapaxes(jnp.stack(Ls, 0), -1, -2)      # (K, N, N)
    y = jnp.einsum('bcn,knq->bckq', x, Lap)           # (B, C, K, N)
    y = y.reshape(B, C * K, N)                        # flatten index c*K + k
    return jnp.einsum('oc,bcn->bon', weight, y) + bias[None, :, None]


if __name__ == "__main__":
    B, C_in, N = 2, 4, 16
    K, C_out = 3, 8

    key = jax.random.PRNGKey(0)
    kx, ka, kw, kb = jax.random.split(key, 4)

    x = jax.random.normal(kx, (B, C_in, N), dtype=jnp.float32)
    adj = jax.random.normal(ka, (N, N), dtype=jnp.float32) * 0.3   # non-symmetric
    weight = jax.random.normal(kw, (C_out, K * C_in), dtype=jnp.float32) * 0.1
    bias = jax.random.normal(kb, (C_out,), dtype=jnp.float32) * 0.1

    ref = gcn_conv_hop_ref(x, adj, weight, bias, K)

    # Exact-path validation (f32 MXU operands)
    out_f32 = jax.block_until_ready(
        gcn_conv_hop(x, adj, weight, bias, K, compute_dtype=jnp.float32))
    assert out_f32.shape == (B, C_out, N)
    assert jnp.allclose(out_f32, ref, rtol=1e-4, atol=1e-4), "f32 path mismatch vs reference"

    # Default fast path: bf16 MXU operands, f32 recurrence state + accumulation
    out_bf16 = jax.block_until_ready(gcn_conv_hop(x, adj, weight, bias, K))
    assert out_bf16.shape == (B, C_out, N)
    assert jnp.allclose(out_bf16, ref, rtol=5e-2, atol=5e-2), "bf16 path mismatch vs reference"

    print("KERNEL_OK")
</pallas_src>

<mosaic_0001>
module attributes {stable_mosaic.version = 11 : i64} {
  func.func @_gcn_fused_kernel(%arg0: i32, %arg1: memref<1x8x128xf32, #tpu.memory_space<vmem>>, %arg2: memref<128x128xf32, #tpu.memory_space<vmem>>, %arg3: memref<3x8x8xf32, #tpu.memory_space<vmem>>, %arg4: memref<8x1xf32, #tpu.memory_space<vmem>>, %arg5: memref<1x8x128xf32, #tpu.memory_space<vmem>>) attributes {dimension_semantics = [#tpu.dimension_semantics<parallel>], iteration_bounds = array<i64: 2>, scalar_prefetch = 0 : i64, scratch_operands = 0 : i64, tpu.core_type = #tpu.core_type<tc>, window_params = [{transform_indices = @transform_0, window_bounds = array<i64: 1, 8, 128>}, {pipeline_mode = #tpu.pipeline_mode<synchronous>, transform_indices = @transform_1, window_bounds = array<i64: 128, 128>}, {pipeline_mode = #tpu.pipeline_mode<synchronous>, transform_indices = @transform_2, window_bounds = array<i64: 3, 8, 8>}, {pipeline_mode = #tpu.pipeline_mode<synchronous>, transform_indices = @transform_3, window_bounds = array<i64: 8, 1>}, {transform_indices = @transform_4, window_bounds = array<i64: 1, 8, 128>}]} {
    %c0 = arith.constant 0 : index
    %c0_0 = arith.constant 0 : index
    %c0_1 = arith.constant 0 : index
    %0 = vector.load %arg1[%c0, %c0_0, %c0_1] : memref<1x8x128xf32, #tpu.memory_space<vmem>>, vector<1x8x128xf32>
    %1 = vector.shape_cast %0 : vector<1x8x128xf32> to vector<8x128xf32>
    %c0_2 = arith.constant 0 : index
    %c0_3 = arith.constant 0 : index
    %2 = vector.load %arg2[%c0_2, %c0_3] : memref<128x128xf32, #tpu.memory_space<vmem>>, vector<128x128xf32>
    %c0_4 = arith.constant 0 : index
    %c0_5 = arith.constant 0 : index
    %3 = vector.load %arg4[%c0_4, %c0_5] : memref<8x1xf32, #tpu.memory_space<vmem>>, vector<8x1xf32>
    %c0_6 = arith.constant 0 : index
    %c0_7 = arith.constant 0 : index
    %c0_8 = arith.constant 0 : index
    %4 = vector.load %arg3[%c0_6, %c0_7, %c0_8] : memref<3x8x8xf32, #tpu.memory_space<vmem>>, vector<1x8x8xf32>
    %5 = vector.shape_cast %4 : vector<1x8x8xf32> to vector<8x8xf32>
    %cst = arith.constant dense<0.000000e+00> : vector<8x128xf32>
    %6 = tpu.matmul %5, %1, %cst {dimension_numbers = #tpu.dot_dimension_numbers<[1], [0], [0], [1], [0, 0, 1, 1], [], []>} : vector<8x8xf32>, vector<8x128xf32>, vector<8x128xf32> -> vector<8x128xf32>
    %cst_9 = arith.constant dense<0.000000e+00> : vector<8x128xf32>
    %7 = tpu.matmul %1, %2, %cst_9 {dimension_numbers = #tpu.dot_dimension_numbers<[1], [0], [0], [1], [0, 0, 1, 1], [], []>} : vector<8x128xf32>, vector<128x128xf32>, vector<8x128xf32> -> vector<8x128xf32>
    %c1 = arith.constant 1 : index
    %c0_10 = arith.constant 0 : index
    %c0_11 = arith.constant 0 : index
    %8 = vector.load %arg3[%c1, %c0_10, %c0_11] : memref<3x8x8xf32, #tpu.memory_space<vmem>>, vector<1x8x8xf32>
    %9 = vector.shape_cast %8 : vector<1x8x8xf32> to vector<8x8xf32>
    %cst_12 = arith.constant dense<0.000000e+00> : vector<8x128xf32>
    %10 = tpu.matmul %9, %7, %cst_12 {dimension_numbers = #tpu.dot_dimension_numbers<[1], [0], [0], [1], [0, 0, 1, 1], [], []>} : vector<8x8xf32>, vector<8x128xf32>, vector<8x128xf32> -> vector<8x128xf32>
    %11 = arith.addf %6, %10 : vector<8x128xf32>
    %cst_13 = arith.constant dense<0.000000e+00> : vector<8x128xf32>
    %12 = tpu.matmul %7, %2, %cst_13 {dimension_numbers = #tpu.dot_dimension_numbers<[1], [0], [0], [1], [0, 0, 1, 1], [], []>} : vector<8x128xf32>, vector<128x128xf32>, vector<8x128xf32> -> vector<8x128xf32>
    %cst_14 = arith.constant 2.000000e+00 : f32
    %13 = vector.broadcast %cst_14 : f32 to vector<8x128xf32>
    %14 = arith.mulf %13, %12 : vector<8x128xf32>
    %15 = arith.subf %14, %1 : vector<8x128xf32>
    %c2 = arith.constant 2 : index
    %c0_15 = arith.constant 0 : index
    %c0_16 = arith.constant 0 : index
    %16 = vector.load %arg3[%c2, %c0_15, %c0_16] : memref<3x8x8xf32, #tpu.memory_space<vmem>>, vector<1x8x8xf32>
    %17 = vector.shape_cast %16 : vector<1x8x8xf32> to vector<8x8xf32>
    %cst_17 = arith.constant dense<0.000000e+00> : vector<8x128xf32>
    %18 = tpu.matmul %17, %15, %cst_17 {dimension_numbers = #tpu.dot_dimension_numbers<[1], [0], [0], [1], [0, 0, 1, 1], [], []>} : vector<8x8xf32>, vector<8x128xf32>, vector<8x128xf32> -> vector<8x128xf32>
    %19 = arith.addf %11, %18 : vector<8x128xf32>
    %20 = vector.broadcast %3 : vector<8x1xf32> to vector<8x128xf32>
    %21 = arith.addf %19, %20 : vector<8x128xf32>
    %c0_18 = arith.constant 0 : index
    %c0_19 = arith.constant 0 : index
    %c0_20 = arith.constant 0 : index
    %22 = vector.load %arg5[%c0_18, %c0_19, %c0_20] : memref<1x8x128xf32, #tpu.memory_space<vmem>>, vector<1x8x128xf32>
    %23 = vector.shape_cast %22 : vector<1x8x128xf32> to vector<8x128xf32>
    %24 = vector.shape_cast %21 : vector<8x128xf32> to vector<1x8x128xf32>
    tpu.vector_store %arg5[%c0_18, %c0_19, %c0_20], %24 {strides = array<i32>} : memref<1x8x128xf32, #tpu.memory_space<vmem>>, vector<1x8x128xf32>,
    return
  }
  func.func @transform_0(%arg0: i32) -> (i32, i32, i32) {
    %c0_i32 = arith.constant 0 : i32
    %c0_i32_0 = arith.constant 0 : i32
    %c0_i32_1 = arith.constant 0 : i32
    return %arg0, %c0_i32, %c0_i32_0 : i32, i32, i32
  }
  func.func @transform_1(%arg0: i32) -> (i32, i32) {
    %c0_i32 = arith.constant 0 : i32
    %c0_i32_0 = arith.constant 0 : i32
    %c0_i32_1 = arith.constant 0 : i32
    return %c0_i32, %c0_i32_0 : i32, i32
  }
  func.func @transform_2(%arg0: i32) -> (i32, i32, i32) {
    %c0_i32 = arith.constant 0 : i32
    %c0_i32_0 = arith.constant 0 : i32
    %c0_i32_1 = arith.constant 0 : i32
    %c0_i32_2 = arith.constant 0 : i32
    return %c0_i32, %c0_i32_0, %c0_i32_1 : i32, i32, i32
  }
  func.func @transform_3(%arg0: i32) -> (i32, i32) {
    %c0_i32 = arith.constant 0 : i32
    %c0_i32_0 = arith.constant 0 : i32
    %c0_i32_1 = arith.constant 0 : i32
    return %c0_i32, %c0_i32_0 : i32, i32
  }
  func.func @transform_4(%arg0: i32) -> (i32, i32, i32) {
    %c0_i32 = arith.constant 0 : i32
    %c0_i32_0 = arith.constant 0 : i32
    %c0_i32_1 = arith.constant 0 : i32
    return %arg0, %c0_i32, %c0_i32_0 : i32, i32, i32
  }
}

</mosaic_0001>

<bundles_post_ra>
// kernel: tpu_custom_call.1
= control target key start
LH: loop header
LB: loop body
LE: loop exit
PB: predicated region body
PF: predicated region fallthrough
CT: control target
= control target key end

     0   :  { %9 = vsyncpa [#allocation3], 0  ;;  %s933_s0 = inlined_call_operand.hbm [shape: f32[2,8,128], index: 0, kind: input, shape index: {}]   ;;  %s934_s1 = inlined_call_operand.hbm [shape: f32[128,128], index: 1, kind: input, shape index: {}]   ;;  %s935_s2 = inlined_call_operand.hbm [shape: f32[3,8,8], index: 2, kind: input, shape index: {}]   ;;  %s936_s3 = inlined_call_operand.vmem [shape: f32[8,1], index: 3, kind: input, shape index: {}]   ;;  %s937_s4 = inlined_call_operand.hbm [shape: f32[2,8,128], index: 4, kind: output, shape index: {}]  }
   0x1   :  { %11 = vsyncpa [#allocation3 + $0x1], 0 }
   0x2   :  { %12 = vsyncpa [#allocation6], 0 }
   0x3   :  { %13 = vsyncpa [#allocation4], 0 }
   0x4   :  { %15 = vsyncpa [#allocation4 + $0x1], 0  ;;  %s778_s15 = smov 0   ;;  %s780_s16 = smov 0  }
   0x5   :  { %s782_s17 = smov 0   ;;  %s784_s18 = smov 0  }
   0x6 LB: > { %s152_s21 = sshll.u32 %s934_s1, 4  ;;  %s802_s22 = sadd.s32 4294967295, %s746_s18   ;;  %s746_s18 = sphi %s784_s18, %s948_s18   ;;  %s742_s17 = sphi %s782_s17, %s947_s17   ;;  %s738_s16 = sphi %s780_s16, %s946_s16   ;;  %s734_s15 = sphi %s778_s15, %s945_s15   ;;  %s153_s21 = int_to_ptr.hbm [resolvable:$true] %s152_s21 }
   0x7   : > { %p497_p0 = scmp.ge.s32.totalorder %s746_s18, 1  ;;  %p42_p1 = scmp.eq.s32.totalorder %s802_s22, 0 }
   0x8   : > { %p141_p2 = scmp.lt.s32.totalorder %s746_s18, 3  ;;  %s748_s24 = smov [#allocation5]  }
   0x9   : > { %s154_s25 = sshll.u32 %s748_s24, 4  ;;  %s166_s28 = sshll.u32 %s935_s2, 4  ;;  %s155_s25 = int_to_ptr.vmem [resolvable:$true] %s154_s25  ;;  %s167_s28 = int_to_ptr.hbm [resolvable:$true] %s166_s28 }
   0xa   : > { %p807_p3 = pnand %p497_p0, %p141_p2  ;;  %s749_s29 = smov [#allocation7]  }
   0xb   : > { %s168_s30 = sshll.u32 %s749_s29, 4  ;;  %s750_s5 = smov 128   ;;  %s169_s30 = int_to_ptr.vmem [resolvable:$true] %s168_s30 }
   0xc   : > { %p527_p4 = pneg %p807_p3  ;;  %s751_s6 = smov 8  }
   0xd   : > { %s496_s7 = sadd.s32 4294967294, %s746_s18   ;;  %s821_s8 = sadd.s32 1, %s746_s18  }
   0xe   : > { %p528_p6 = pnand %p527_p4, %p42_p1  ;;  %s25_s9 = ssub.s32 %s746_s18, %s821_s8 }
   0xf   : > { %s28_s10 = sadd.s32 1, %s742_s17  ;;  %p26_p7 = scmp.eq.s32.totalorder %s25_s9, 0 }
  0x10   : > { %530 = dma.hbm_to_vmem [thread:$0]  (!%p528_p6), %s153_s21, 2048, %s155_s25, [#allocation6], %s750_s5, %s750_s5, %s751_s6  }
  0x11   : > { %533 = dma.hbm_to_vmem [thread:$0]  (!%p528_p6), %s167_s28, 384, %s169_s30, [#allocation6], %s750_s5, %s750_s5, %s751_s6  }
  0x12   : > { %p35_p8 = scmp.ne.s32.totalorder %s742_s17, %s738_s16  ;;  %p36_p9 = scmp.eq.s32.totalorder %s746_s18, 0 }
  0x13   : > { %p41_p10 = scmp.ne.s32.totalorder %s738_s16, %s734_s15  ;;  %p128_p13 = scmp.eq.s32.totalorder %s802_s22, 1 }
  0x14   : > { %s832_s11 = scalar_select %p26_p7, %s742_s17, %s28_s10  }
  0x15   : > { %p834_p11 = por %p36_p9, %p35_p8  ;;  %p840_p12 = por %p42_p1, %p41_p10 }
  0x16   : > { %p134_p0 = scmp.eq.s32.totalorder %s496_s7, 1  ;;  %p544_p2 = scmp.lt.s32.totalorder %s746_s18, 2 }
  0x17   : > { %s185_s14 = sand.u32 1, %s742_s17   ;;  %p847_p4 = por %p128_p13, %p35_p8 }
  0x18   : > { %p851_p6 = por %p134_p0, %p41_p10  ;;  %s501_s21 = sshll.u32 %s185_s14, 3 }
  0x19   : > { %s502_s24 = sshll.u32 %s746_s18, 3  ;;  %s189_s28 = scalar_lea.vmem [#allocation2], %s501_s21 }
  0x1a   : > { %s193_s27 = scalar_lea.hbm %s933_s0, %s502_s24  ;;  %s197_s29 = sshll.u32 %s189_s28, 4  ;;  %s198_s29 = int_to_ptr.vmem [resolvable:$true] %s197_s29 }
  0x1b   : > { %s195_s30 = sshll.u32 %s193_s27, 4  ;;  %p861_p7 = pnand %p544_p2, %p834_p11  ;;  %s196_s30 = int_to_ptr.hbm [resolvable:$true] %s195_s30 }
  0x1c   : > { %s186_s6 = scalar_lea.sflag [#allocation3], %s185_s14  ;;  %s646_s7 = sshra.s32 %s196_s30, 4  ;;  %s647_s7 = int_to_ptr.hbm [resolvable:$true] %s646_s7 }
  0x1d   : > { %s648_s9 = scalar_lea.hbm %s647_s7, 8  ;;  %p650_p9 = pneg %p861_p7 }
  0x1e   : > { %p649_p8 = scmp.ne.s32.totalorder %s647_s7, %s648_s9  ;;  %s653_s24 = scalar_lea.hbm %s933_s0, 16 }
  0x1f   : > { %p654_p11 = scmp.lt.s32.totalorder %s647_s7, %s933_s0  ;;  %p655_p0 = scmp.lt.s32.totalorder %s653_s24, %s648_s9 }
  0x20   : > { %p651_p10 = pnand %p650_p9, %p649_p8 }
  0x21   : > { %p656_p2 = por %p655_p0, %p654_p11 }
  0x22   : > { %p652_p13 = pneg %p651_p10 }
  0x24   : > { %p657_p5 = pnand %p656_p2, %p652_p13 }
  0x26   : > { %660 = shalt.err (!%p657_p5)
}
  0x27   : > { %537 = dma.hbm_to_vmem [thread:$0]  (!%p861_p7), %s196_s30, 128, %s198_s29, %s186_s6  }
  0x28   : > { %206 = sbr.rel (%p807_p3) target bundleno = 476 (0x1dc), region = 36  ;;  %s878_s14 = sand.u32 (!%p807_p3), 1, %s738_s16  }
  0x29   : > { %s504_s26 = sshll.u32 (!%p807_p3), %s878_s14, 3  ;;  %s209_s27 = scalar_lea.sflag (!%p807_p3), [#allocation3], %s878_s14 }
  0x2a   : > { %s212_s28 = scalar_lea.vmem (!%p807_p3), [#allocation2], %s504_s26 }
  0x2d   : > { %721 = dma.done.wait (%p840_p12), %s209_s27, 128  }
  0x2e   : > { %723 = vsyncadd (%p840_p12), %s209_s27, 4294967168 }
  0x2f   : > { %725 = dma.done.wait (%p42_p1), [#allocation6], 2432  }
  0x30   : > { %727 = vsyncadd (%p42_p1), [#allocation6], 4294964864  ;;  %v264_v0 = vld [vmem:[#allocation5 + $0x78] sm:$0xff]  ;;  %v263_v1 = vld [vmem:[#allocation5 + $0x70] sm:$0xff]  ;;  %vm289_vm0 = vcmask 64512   ;;  %v752_v21 = vmov 0  }
  0x31   : > { %267 = vmatpush.msra.mxu0 %v264_v0  ;;  %336 = vmatpush.msra.mxu3 %v264_v0  ;;  %v262_v2 = vld [vmem:[#allocation5 + $0x68] sm:$0xff]  ;;  %v261_v3 = vld [vmem:[#allocation5 + $0x60] sm:$0xff]  ;;  %v248_v4 = vld [vmem:[%s212_s28] sm:$0xff]  ;;  %s512_s29 = sshll.u32 %s802_s22, 3  ;;  %s247_s7 = scalar_lea.vmem [#allocation8], %s504_s26 }
  0x32   : > { %v260_v5 = vld [vmem:[#allocation5 + $0x58] sm:$0xff]  ;;  %331 = vmatpush.msra.mxu2 %v248_v4  ;;  %v259_v6 = vld [vmem:[#allocation5 + $0x50] sm:$0xff]  ;;  %v258_v7 = vld [vmem:[#allocation5 + $0x48] sm:$0xff]  ;;  %585 = vset.pattern.permute.xlu0 %v752_v21  ;;  %s402_s6 = scalar_lea.hbm %s937_s4, %s512_s29  ;;  %s404_s9 = sshll.u32 %s247_s7, 4  ;;  %s405_s9 = int_to_ptr.vmem [resolvable:$true] %s404_s9 }
  0x33   : > { %268 = vmatpush.msra.mxu0 %v263_v1  ;;  %337 = vmatpush.msra.mxu3 %v263_v1  ;;  %v257_v8 = vld [vmem:[#allocation5 + $0x40] sm:$0xff]  ;;  %v256_v9 = vld [vmem:[#allocation5 + $0x38] sm:$0xff]  ;;  %v255_v10 = vld [vmem:[#allocation5 + $0x30] sm:$0xff]  ;;  %s406_s10 = sshll.u32 %s402_s6, 4  ;;  %s392_s21 = scalar_lea.sflag [#allocation4], %s878_s14  ;;  %s407_s10 = int_to_ptr.hbm [resolvable:$true] %s406_s10 }
  0x34   : > { %v254_v11 = vld [vmem:[#allocation5 + $0x28] sm:$0xff]  ;;  %v253_v12 = vld [vmem:[#allocation5 + $0x20] sm:$0xff]  ;;  %v252_v13 = vld [vmem:[#allocation5 + $0x18] sm:$0xff]  ;;  %s690_s22 = sshra.s32 %s407_s10, 4  ;;  %s696_s27 = scalar_lea.hbm %s937_s4, 16  ;;  %s691_s22 = int_to_ptr.hbm [resolvable:$true] %s690_s22 }
  0x35   : > { %269 = vmatpush.msra.mxu0 %v262_v2  ;;  %338 = vmatpush.msra.mxu3 %v262_v2  ;;  %v251_v14 = vld [vmem:[#allocation5 + $0x10] sm:$0xff]  ;;  %v250_v15 = vld [vmem:[#allocation5 + $0x8] sm:$0xff]  ;;  %v249_v16 = vld [vmem:[#allocation5] sm:$0xff]  ;;  %s692_s24 = scalar_lea.hbm %s691_s22, 8  ;;  %p697_p12 = scmp.lt.s32.totalorder %s691_s22, %s937_s4 }
  0x36   : > { %v266_v17 = vld [vmem:[#allocation7] sm:$0xff]  ;;  %v288_v18 = vld [vmem:[#allocation7 + $0x8] sm:$0xff]  ;;  %v265_v20 = vld [vmem:[%s936_s3] sm:$0xff]  ;;  %p693_p1 = scmp.ne.s32.totalorder %s691_s22, %s692_s24  ;;  %p698_p7 = scmp.lt.s32.totalorder %s696_s27, %s692_s24 }
  0x37   : > { %270 = vmatpush.msra.mxu0 %v261_v3  ;;  %339 = vmatpush.msra.mxu3 %v261_v3  ;;  %v359_v25 = vld [vmem:[#allocation7 + $0x10] sm:$0xff] }
  0x38   : > { %509 = vmatmul.msk.f32.vlgmr.msra.gmra.mxu2 %vm289_vm0, %v266_v17  ;;  %386 = vperm.xlu0 %585, %v265_v20   ;;  %p694_p3 = pnand %p693_p1, %p847_p4  ;;  %p699_p8 = por %p698_p7, %p697_p12 }
  0x39   : > { %271 = vmatpush.msra.mxu0 %v260_v5  ;;  %340 = vmatpush.msra.mxu3 %v260_v5 }
  0x3a   : > { %p695_p5 = pneg %p694_p3 }
  0x3b   : > { %272 = vmatpush.msra.mxu0 %v259_v6  ;;  %341 = vmatpush.msra.mxu3 %v259_v6 }
  0x3c   : > { %p700_p9 = pnand %p699_p8, %p695_p5 }
  0x3d   : > { %273 = vmatpush.msra.mxu0 %v258_v7  ;;  %342 = vmatpush.msra.mxu3 %v258_v7 }
  0x3f   : > { %274 = vmatpush.msra.mxu0 %v257_v8  ;;  %343 = vmatpush.msra.mxu3 %v257_v8 }
  0x41   : > { %275 = vmatpush.msra.mxu0 %v256_v9  ;;  %344 = vmatpush.msra.mxu3 %v256_v9 }
  0x43   : > { %276 = vmatpush.msra.mxu0 %v255_v10  ;;  %345 = vmatpush.msra.mxu3 %v255_v10 }
  0x45   : > { %277 = vmatpush.msra.mxu0 %v254_v11  ;;  %346 = vmatpush.msra.mxu3 %v254_v11 }
  0x47   : > { %278 = vmatpush.msra.mxu0 %v253_v12  ;;  %347 = vmatpush.msra.mxu3 %v253_v12 }
  0x49   : > { %279 = vmatpush.msra.mxu0 %v252_v13  ;;  %348 = vmatpush.msra.mxu3 %v252_v13 }
  0x4b   : > { %280 = vmatpush.msra.mxu0 %v251_v14  ;;  %349 = vmatpush.msra.mxu3 %v251_v14 }
  0x4d   : > { %281 = vmatpush.msra.mxu0 %v250_v15  ;;  %350 = vmatpush.msra.mxu3 %v250_v15 }
  0x4f   : > { %282 = vmatpush.msra.mxu0 %v249_v16  ;;  %351 = vmatpush.msra.mxu3 %v249_v16 }
  0x50   : > { %283 = vmatmul.f32.vlgmr.msra.gmra.mxu0 %v248_v4 }
  0xaa   : > { %v387_v30 = vpop.permute.xlu0 %386 }
  0xbb   : > { %v333_v27 = vpop.f32.mrf.mxu2 }
  0xcd   : > { %v284_v19 = vpop.f32.mrf.mxu0 }
  0xce   : > { %308 = vmatpush.msra.mxu1 %v284_v19  ;;  %352 = vmatmul.f32.vlgmr.msra.gmra.mxu3 %v284_v19 }
  0xcf   : > { %508 = vmatmul.msk.f32.vlgmr.msra.gmra.mxu1 %vm289_vm0, %v288_v18 }
 0x14c   : > { %v310_v26 = vpop.f32.mrf.mxu1 }
 0x14d   : > { %v334_v28 = vadd.f32 %v333_v27, %v310_v26 }
 0x151   : > { %v353_v22 = vpop.f32.mrf.mxu3 }
 0x152   : > { %v356_v23 = vmul.f32 2.0, %v353_v22 }
 0x154   : > { %v357_v24 = vsub.f32 %v356_v23, %v248_v4 }
 0x156   : > { %378 = vmatpush.msrb.mxu1 %v357_v24 }
 0x157   : > { %510 = vmatmul.msk.f32.vlgmr.msrb.gmra.mxu1 %vm289_vm0, %v359_v25 }
 0x1d4   : > { %v380_v29 = vpop.f32.mrf.mxu1 }
 0x1d5   : > { %v383_v31 = vadd.f32 %v380_v29, %v334_v28 }
 0x1d7   : > { %v389_v32 = vadd.f32 %v387_v30, %v383_v31 }
 0x1d9   : > { %390 = vst [vmem:[%s247_s7] sm:$0xff] %v389_v32 }
 0x1da   : > { %703 = shalt.err (!%p700_p9)
}
 0x1db   : > { %525 = dma.vmem_to_hbm [thread:$0]  (%p847_p4), %s405_s9, 128, %s407_s10, %s392_s21  }
 0x1dc PF: > { %s418_s14 = sand.u32 1, %s734_s15   ;;  %p944_p10 = scmp.ge.s32.totalorder %s746_s18, 2 }
 0x1dd   : > { %s419_s23 = scalar_lea.sflag [#allocation4], %s418_s14 }
 0x1de   : > { %p539_p13 = pnand %p944_p10, %p851_p6 }
 0x1e0   : > { %p540_p11 = pneg %p539_p13 }
 0x1e2   : > { %729 = dma.done.wait (%p540_p11), %s419_s23, 128  }
 0x1e3   : > { %731 = vsyncadd (%p540_p11), %s419_s23, 4294967168  ;;  %p18_p0 = scmp.ge.s32.totalorder %s821_s8, 4   ;;  %s945_s15 = smov %s738_s16 }
 0x1e4   : > { %s946_s16 = smov %s742_s17  ;;  %s947_s17 = smov %s832_s11 }
 0x1e5   : > { %s948_s18 = smov %s821_s8  ;;  %20 = sbr.rel (!%p18_p0) target bundleno = 6 (0x6), region = 91 }
 0x1ea   :  { %425 = vsyncpa [#allocation3], 1 }
 0x1eb   :  { %427 = vsyncpa [#allocation3 + $0x1], 1 }
 0x1ec   :  { %428 = vsyncpa [#allocation6], 1 }
 0x1ed   :  { %429 = vsyncpa [#allocation4], 1 }
 0x1ee   :  { %431 = vsyncpa [#allocation4 + $0x1], 1 }

</bundles_post_ra>
